<compile_context>
chip_gen: v7x
topology: tpu7x:2x2x1
jax: 0.10.0
libtpu: 0.0.40
codegen_flags: <defaults>
</compile_context>

<pallas_src>
import functools

import jax
import jax.numpy as jnp
from jax.experimental import pallas as pl
from jax.experimental.pallas import tpu as pltpu

EPS = 1e-5
NEG_INF = -1e30          # bias for padded logit lanes -> exp() underflows to 0
LANE = 128
MAX_TILE_B = 1024        # rows per batch tile on the large-B path
SINGLE_TILE_MAX = 512    # up to this many (8-aligned) rows -> one fused step


def _round_up(x, m):
    return (x + m - 1) // m * m


# ---------------------------------------------------------------------------
# Shared compute body: BN(scale/shift) -> [Linear -> ReLU] x3 -> Linear
# -> Softmax.  bf16 MXU operands, f32 accumulation; all widths 128-aligned.
# ---------------------------------------------------------------------------
def _mlp_body(x, mean, var, gamma, beta, w1, b1, w2, b2, w3, b3, w4, b4):
    scale = gamma * jax.lax.rsqrt(var + EPS)              # (1, S) f32
    shift = beta - mean * scale
    xn = (x * scale + shift).astype(jnp.bfloat16)         # (TB, S)

    h = jnp.dot(xn, w1, preferred_element_type=jnp.float32) + b1
    h = jnp.maximum(h, 0.0)
    h = jnp.dot(h.astype(jnp.bfloat16), w2, preferred_element_type=jnp.float32) + b2
    h = jnp.maximum(h, 0.0)
    h = jnp.dot(h.astype(jnp.bfloat16), w3, preferred_element_type=jnp.float32) + b3
    h = jnp.maximum(h, 0.0)
    logits = jnp.dot(h.astype(jnp.bfloat16), w4, preferred_element_type=jnp.float32) + b4

    # stable, exact softmax; padded lanes hold ~-1e30 so they contribute 0
    m = jnp.max(logits, axis=1, keepdims=True)
    e = jnp.exp(logits - m)                                # EUP
    return e / jnp.sum(e, axis=1, keepdims=True)


# ---------------------------------------------------------------------------
# Small-batch kernel: one grid step, BN stats fused (full batch is the tile).
# Zero-padded batch rows contribute nothing to sum/sumsq, so stats stay exact.
# ---------------------------------------------------------------------------
def _fused_kernel(gamma_ref, beta_ref,
                  w1_ref, b1_ref, w2_ref, b2_ref,
                  w3_ref, b3_ref, w4_ref, b4_ref,
                  x_ref, out_ref, *, inv_batch):
    x = x_ref[...]                                         # (TB, S) f32
    mean = jnp.sum(x, axis=0, keepdims=True) * inv_batch
    var = jnp.sum(x * x, axis=0, keepdims=True) * inv_batch - mean * mean
    var = jnp.maximum(var, 0.0)                            # guard cancellation
    out_ref[...] = _mlp_body(
        x, mean, var, gamma_ref[...], beta_ref[...],
        w1_ref[...], b1_ref[...], w2_ref[...], b2_ref[...],
        w3_ref[...], b3_ref[...], w4_ref[...], b4_ref[...])


# ---------------------------------------------------------------------------
# Large-batch kernel: stats precomputed in the wrapper, batch tiles parallel.
# ---------------------------------------------------------------------------
def _tiled_kernel(mean_ref, var_ref, gamma_ref, beta_ref,
                  w1_ref, b1_ref, w2_ref, b2_ref,
                  w3_ref, b3_ref, w4_ref, b4_ref,
                  x_ref, out_ref):
    out_ref[...] = _mlp_body(
        x_ref[...], mean_ref[...], var_ref[...], gamma_ref[...], beta_ref[...],
        w1_ref[...], b1_ref[...], w2_ref[...], b2_ref[...],
        w3_ref[...], b3_ref[...], w4_ref[...], b4_ref[...])


def _choose_tiles(b_al):
    """Even number of tiles (>=2) for v7x megacore, tiles capped at MAX_TILE_B."""
    tile_b = min(MAX_TILE_B, _round_up(pl.cdiv(b_al, 2), 8))
    num_tiles = pl.cdiv(b_al, tile_b)
    if num_tiles % 2:
        tile_b = _round_up(pl.cdiv(b_al, num_tiles + 1), 8)
        num_tiles = pl.cdiv(b_al, tile_b)
    return tile_b, num_tiles


@functools.partial(jax.jit, static_argnames=("action_size",))
def network_forward(x, params, action_size):
    """x: (B, S) f32.  params: output of prepare_params (bf16, lane-padded)."""
    B, S = x.shape
    gamma, beta, w1, b1, w2, b2, w3, b3, w4, b4 = params
    a_pad = w4.shape[1]

    x = x.astype(jnp.float32)
    b_al = _round_up(B, 8)

    const = lambda i: (0, 0)
    weight_specs = [
        pl.BlockSpec(gamma.shape, const), pl.BlockSpec(beta.shape, const),
        pl.BlockSpec(w1.shape, const), pl.BlockSpec(b1.shape, const),
        pl.BlockSpec(w2.shape, const), pl.BlockSpec(b2.shape, const),
        pl.BlockSpec(w3.shape, const), pl.BlockSpec(b3.shape, const),
        pl.BlockSpec(w4.shape, const), pl.BlockSpec(b4.shape, const),
    ]

    if b_al <= SINGLE_TILE_MAX:
        # -------- single fused grid step: stats computed in-kernel --------
        b_pad = b_al
        if b_pad != B:
            x = jnp.pad(x, ((0, b_pad - B), (0, 0)))   # zero rows: stats exact
        out = pl.pallas_call(
            functools.partial(_fused_kernel, inv_batch=1.0 / B),
            out_shape=jax.ShapeDtypeStruct((b_pad, a_pad), jnp.float32),
            grid=(1,),
            in_specs=weight_specs + [pl.BlockSpec((b_pad, S), lambda i: (i, 0))],
            out_specs=pl.BlockSpec((b_pad, a_pad), lambda i: (i, 0)),
            compiler_params=pltpu.CompilerParams(
                dimension_semantics=("arbitrary",)),
        )(gamma, beta, w1, b1, w2, b2, w3, b3, w4, b4, x)
    else:
        # -------- large batch: tiny XLA stats + batch-tiled MLP pass --------
        mean = jnp.mean(x, axis=0, keepdims=True)
        var = jnp.maximum(
            jnp.mean(x * x, axis=0, keepdims=True) - mean * mean, 0.0)
        tile_b, num_tiles = _choose_tiles(b_al)
        b_pad = tile_b * num_tiles
        if b_pad != B:
            x = jnp.pad(x, ((0, b_pad - B), (0, 0)))
        out = pl.pallas_call(
            _tiled_kernel,
            out_shape=jax.ShapeDtypeStruct((b_pad, a_pad), jnp.float32),
            grid=(num_tiles,),
            in_specs=[pl.BlockSpec((1, S), const), pl.BlockSpec((1, S), const)]
                     + weight_specs
                     + [pl.BlockSpec((tile_b, S), lambda i: (i, 0))],
            out_specs=pl.BlockSpec((tile_b, a_pad), lambda i: (i, 0)),
            compiler_params=pltpu.CompilerParams(
                dimension_semantics=("parallel",)),
        )(mean, var, gamma, beta, w1, b1, w2, b2, w3, b3, w4, b4, x)

    return out[:B, :action_size]


# ---------------------------------------------------------------------------
# Parameter construction (PyTorch-equivalent) and one-time kernel prep.
# ---------------------------------------------------------------------------
def xavier_uniform(key, fan_in, fan_out):
    # Matches torch.nn.init.xavier_uniform_ on a (out, in) weight; built
    # directly in (in, out) layout (transpose of the PyTorch weight).
    bound = (6.0 / (fan_in + fan_out)) ** 0.5
    return jax.random.uniform(key, (fan_in, fan_out), jnp.float32, -bound, bound)


def init_network_params(key, state_size, action_size, hidden=(260, 260, 130)):
    """PyTorch-equivalent parameters: f32, weights in (in, out) layout."""
    dims = [state_size, *hidden, action_size]
    keys = jax.random.split(key, len(dims) - 1)
    gamma = jnp.ones((1, state_size), jnp.float32)      # BatchNorm1d weight
    beta = jnp.zeros((1, state_size), jnp.float32)      # BatchNorm1d bias
    ws, bs = [], []
    for k, din, dout in zip(keys, dims[:-1], dims[1:]):
        ws.append(xavier_uniform(k, din, dout))
        bs.append(jnp.full((1, dout), 0.01, jnp.float32))
    return (gamma, beta, ws[0], bs[0], ws[1], bs[1], ws[2], bs[2], ws[3], bs[3])


def prepare_params(params):
    """One-time prep OUTSIDE jit: zero-pad every layer width to a multiple of
    128 lanes and cast matmul weights to bf16.  Zero-padded weight rows/cols
    are exact (zero activations through ReLU, zero contribution downstream);
    padded logit lanes get a -1e30 bias so the in-kernel softmax ignores them."""
    gamma, beta, w1, b1, w2, b2, w3, b3, w4, b4 = params

    def pad_w(w, rows, cols):
        w = jnp.pad(w, ((0, rows - w.shape[0]), (0, cols - w.shape[1])))
        return w.astype(jnp.bfloat16)

    def pad_b(b, cols, fill=0.0):
        return jnp.pad(b, ((0, 0), (0, cols - b.shape[1])),
                       constant_values=fill).astype(jnp.float32)

    s = w1.shape[0]
    h1 = _round_up(w1.shape[1], LANE)    # 260 -> 384
    h2 = _round_up(w2.shape[1], LANE)    # 260 -> 384
    h3 = _round_up(w3.shape[1], LANE)    # 130 -> 256
    ap = _round_up(w4.shape[1], LANE)    # A   -> 128

    w1p, b1p = pad_w(w1, s, h1), pad_b(b1, h1)
    w2p, b2p = pad_w(w2, h1, h2), pad_b(b2, h2)
    w3p, b3p = pad_w(w3, h2, h3), pad_b(b3, h3)
    w4p, b4p = pad_w(w4, h3, ap), pad_b(b4, ap, fill=NEG_INF)
    return (gamma, beta, w1p, b1p, w2p, b2p, w3p, b3p, w4p, b4p)


if __name__ == "__main__":
    STATE_SIZE = 32
    ACTION_SIZE = 3
    BATCH = 8

    key = jax.random.PRNGKey(0)
    k_params, k_x = jax.random.split(key)
    raw_params = init_network_params(k_params, STATE_SIZE, ACTION_SIZE)
    params = prepare_params(raw_params)        # one-time, outside the hot path
    x = jax.random.normal(k_x, (BATCH, STATE_SIZE), jnp.float32)

    out = network_forward(x, params, ACTION_SIZE)
    jax.block_until_ready(out)

    # pure-JAX f32 reference (training-mode BatchNorm) for a sanity check
    def reference(xr, p):
        g, be, rw1, rb1, rw2, rb2, rw3, rb3, rw4, rb4 = p
        mu = jnp.mean(xr, 0, keepdims=True)
        va = jnp.mean((xr - mu) ** 2, 0, keepdims=True)
        h = (xr - mu) / jnp.sqrt(va + EPS) * g + be
        for w, b in ((rw1, rb1), (rw2, rb2), (rw3, rb3)):
            h = jnp.maximum(h @ w + b, 0.0)
        return jax.nn.softmax(h @ rw4 + rb4, axis=1)

    ref = reference(x, raw_params)

    assert out.shape == (BATCH, ACTION_SIZE)
    assert jnp.allclose(jnp.sum(out, axis=1), 1.0, atol=1e-3)   # exact softmax
    assert bool(jnp.all(out >= 0.0))
    assert jnp.allclose(out, ref, atol=5e-2)                    # bf16 MXU ops
    print("KERNEL_OK")
</pallas_src>

<mosaic_0001>
module attributes {stable_mosaic.version = 11 : i64} {
  func.func @_fused_kernel(%arg0: i32, %arg1: memref<1x32xf32, #tpu.memory_space<vmem>>, %arg2: memref<1x32xf32, #tpu.memory_space<vmem>>, %arg3: memref<32x384xbf16, #tpu.memory_space<vmem>>, %arg4: memref<1x384xf32, #tpu.memory_space<vmem>>, %arg5: memref<384x384xbf16, #tpu.memory_space<vmem>>, %arg6: memref<1x384xf32, #tpu.memory_space<vmem>>, %arg7: memref<384x256xbf16, #tpu.memory_space<vmem>>, %arg8: memref<1x256xf32, #tpu.memory_space<vmem>>, %arg9: memref<256x128xbf16, #tpu.memory_space<vmem>>, %arg10: memref<1x128xf32, #tpu.memory_space<vmem>>, %arg11: memref<8x32xf32, #tpu.memory_space<vmem>>, %arg12: memref<8x128xf32, #tpu.memory_space<vmem>>) attributes {dimension_semantics = [#tpu.dimension_semantics<arbitrary>], iteration_bounds = array<i64: 1>, scalar_prefetch = 0 : i64, scratch_operands = 0 : i64, tpu.core_type = #tpu.core_type<tc>, window_params = [{pipeline_mode = #tpu.pipeline_mode<synchronous>, transform_indices = @transform_0, window_bounds = array<i64: 1, 32>}, {pipeline_mode = #tpu.pipeline_mode<synchronous>, transform_indices = @transform_1, window_bounds = array<i64: 1, 32>}, {pipeline_mode = #tpu.pipeline_mode<synchronous>, transform_indices = @transform_2, window_bounds = array<i64: 32, 384>}, {pipeline_mode = #tpu.pipeline_mode<synchronous>, transform_indices = @transform_3, window_bounds = array<i64: 1, 384>}, {pipeline_mode = #tpu.pipeline_mode<synchronous>, transform_indices = @transform_4, window_bounds = array<i64: 384, 384>}, {pipeline_mode = #tpu.pipeline_mode<synchronous>, transform_indices = @transform_5, window_bounds = array<i64: 1, 384>}, {pipeline_mode = #tpu.pipeline_mode<synchronous>, transform_indices = @transform_6, window_bounds = array<i64: 384, 256>}, {pipeline_mode = #tpu.pipeline_mode<synchronous>, transform_indices = @transform_7, window_bounds = array<i64: 1, 256>}, {pipeline_mode = #tpu.pipeline_mode<synchronous>, transform_indices = @transform_8, window_bounds = array<i64: 256, 128>}, {pipeline_mode = #tpu.pipeline_mode<synchronous>, transform_indices = @transform_9, window_bounds = array<i64: 1, 128>}, {transform_indices = @transform_10, window_bounds = array<i64: 8, 32>}, {transform_indices = @transform_11, window_bounds = array<i64: 8, 128>}]} {
    %c0 = arith.constant 0 : index
    %c0_0 = arith.constant 0 : index
    %0 = vector.load %arg11[%c0, %c0_0] : memref<8x32xf32, #tpu.memory_space<vmem>>, vector<8x32xf32>
    %cst = arith.constant dense<0.000000e+00> : vector<32xf32>
    %1 = vector.multi_reduction <add>, %0, %cst [0] : vector<8x32xf32> to vector<32xf32>
    %2 = vector.shape_cast %1 : vector<32xf32> to vector<1x32xf32>
    %cst_1 = arith.constant 1.250000e-01 : f32
    %3 = vector.broadcast %cst_1 : f32 to vector<1x32xf32>
    %4 = arith.mulf %2, %3 : vector<1x32xf32>
    %5 = arith.mulf %0, %0 : vector<8x32xf32>
    %cst_2 = arith.constant dense<0.000000e+00> : vector<32xf32>
    %6 = vector.multi_reduction <add>, %5, %cst_2 [0] : vector<8x32xf32> to vector<32xf32>
    %7 = vector.shape_cast %6 : vector<32xf32> to vector<1x32xf32>
    %cst_3 = arith.constant 1.250000e-01 : f32
    %8 = vector.broadcast %cst_3 : f32 to vector<1x32xf32>
    %9 = arith.mulf %7, %8 : vector<1x32xf32>
    %10 = arith.mulf %4, %4 : vector<1x32xf32>
    %11 = arith.subf %9, %10 : vector<1x32xf32>
    %cst_4 = arith.constant 0.000000e+00 : f32
    %12 = vector.broadcast %cst_4 : f32 to vector<1x32xf32>
    %13 = arith.maximumf %11, %12 : vector<1x32xf32>
    %c0_5 = arith.constant 0 : index
    %c0_6 = arith.constant 0 : index
    %14 = vector.load %arg1[%c0_5, %c0_6] : memref<1x32xf32, #tpu.memory_space<vmem>>, vector<1x32xf32>
    %c0_7 = arith.constant 0 : index
    %c0_8 = arith.constant 0 : index
    %15 = vector.load %arg2[%c0_7, %c0_8] : memref<1x32xf32, #tpu.memory_space<vmem>>, vector<1x32xf32>
    %c0_9 = arith.constant 0 : index
    %c0_10 = arith.constant 0 : index
    %16 = vector.load %arg3[%c0_9, %c0_10] : memref<32x384xbf16, #tpu.memory_space<vmem>>, vector<32x384xbf16>
    %c0_11 = arith.constant 0 : index
    %c0_12 = arith.constant 0 : index
    %17 = vector.load %arg4[%c0_11, %c0_12] : memref<1x384xf32, #tpu.memory_space<vmem>>, vector<1x384xf32>
    %c0_13 = arith.constant 0 : index
    %c0_14 = arith.constant 0 : index
    %18 = vector.load %arg5[%c0_13, %c0_14] : memref<384x384xbf16, #tpu.memory_space<vmem>>, vector<384x384xbf16>
    %c0_15 = arith.constant 0 : index
    %c0_16 = arith.constant 0 : index
    %19 = vector.load %arg6[%c0_15, %c0_16] : memref<1x384xf32, #tpu.memory_space<vmem>>, vector<1x384xf32>
    %c0_17 = arith.constant 0 : index
    %c0_18 = arith.constant 0 : index
    %20 = vector.load %arg7[%c0_17, %c0_18] : memref<384x256xbf16, #tpu.memory_space<vmem>>, vector<384x256xbf16>
    %c0_19 = arith.constant 0 : index
    %c0_20 = arith.constant 0 : index
    %21 = vector.load %arg8[%c0_19, %c0_20] : memref<1x256xf32, #tpu.memory_space<vmem>>, vector<1x256xf32>
    %c0_21 = arith.constant 0 : index
    %c0_22 = arith.constant 0 : index
    %22 = vector.load %arg9[%c0_21, %c0_22] : memref<256x128xbf16, #tpu.memory_space<vmem>>, vector<256x128xbf16>
    %c0_23 = arith.constant 0 : index
    %c0_24 = arith.constant 0 : index
    %23 = vector.load %arg10[%c0_23, %c0_24] : memref<1x128xf32, #tpu.memory_space<vmem>>, vector<1x128xf32>
    %cst_25 = arith.constant 9.99999974E-6 : f32
    %24 = vector.broadcast %cst_25 : f32 to vector<1x32xf32>
    %25 = arith.addf %13, %24 : vector<1x32xf32>
    %26 = math.rsqrt %25 : vector<1x32xf32>
    %27 = arith.mulf %14, %26 : vector<1x32xf32>
    %28 = arith.mulf %4, %27 : vector<1x32xf32>
    %29 = arith.subf %15, %28 : vector<1x32xf32>
    %30 = vector.broadcast %27 : vector<1x32xf32> to vector<8x32xf32>
    %31 = arith.mulf %0, %30 : vector<8x32xf32>
    %32 = vector.broadcast %29 : vector<1x32xf32> to vector<8x32xf32>
    %33 = arith.addf %31, %32 : vector<8x32xf32>
    %34 = arith.truncf %33 : vector<8x32xf32> to vector<8x32xbf16>
    %cst_26 = arith.constant dense<0.000000e+00> : vector<8x384xf32>
    %35 = tpu.matmul %34, %16, %cst_26 {dimension_numbers = #tpu.dot_dimension_numbers<[1], [0], [0], [1], [0, 0, 1, 1], [], []>} : vector<8x32xbf16>, vector<32x384xbf16>, vector<8x384xf32> -> vector<8x384xf32>
    %36 = vector.broadcast %17 : vector<1x384xf32> to vector<8x384xf32>
    %37 = arith.addf %35, %36 : vector<8x384xf32>
    %cst_27 = arith.constant 0.000000e+00 : f32
    %38 = vector.broadcast %cst_27 : f32 to vector<8x384xf32>
    %39 = arith.maximumf %37, %38 : vector<8x384xf32>
    %40 = arith.truncf %39 : vector<8x384xf32> to vector<8x384xbf16>
    %cst_28 = arith.constant dense<0.000000e+00> : vector<8x384xf32>
    %41 = tpu.matmul %40, %18, %cst_28 {dimension_numbers = #tpu.dot_dimension_numbers<[1], [0], [0], [1], [0, 0, 1, 1], [], []>} : vector<8x384xbf16>, vector<384x384xbf16>, vector<8x384xf32> -> vector<8x384xf32>
    %42 = vector.broadcast %19 : vector<1x384xf32> to vector<8x384xf32>
    %43 = arith.addf %41, %42 : vector<8x384xf32>
    %cst_29 = arith.constant 0.000000e+00 : f32
    %44 = vector.broadcast %cst_29 : f32 to vector<8x384xf32>
    %45 = arith.maximumf %43, %44 : vector<8x384xf32>
    %46 = arith.truncf %45 : vector<8x384xf32> to vector<8x384xbf16>
    %cst_30 = arith.constant dense<0.000000e+00> : vector<8x256xf32>
    %47 = tpu.matmul %46, %20, %cst_30 {dimension_numbers = #tpu.dot_dimension_numbers<[1], [0], [0], [1], [0, 0, 1, 1], [], []>} : vector<8x384xbf16>, vector<384x256xbf16>, vector<8x256xf32> -> vector<8x256xf32>
    %48 = vector.broadcast %21 : vector<1x256xf32> to vector<8x256xf32>
    %49 = arith.addf %47, %48 : vector<8x256xf32>
    %cst_31 = arith.constant 0.000000e+00 : f32
    %50 = vector.broadcast %cst_31 : f32 to vector<8x256xf32>
    %51 = arith.maximumf %49, %50 : vector<8x256xf32>
    %52 = arith.truncf %51 : vector<8x256xf32> to vector<8x256xbf16>
    %cst_32 = arith.constant dense<0.000000e+00> : vector<8x128xf32>
    %53 = tpu.matmul %52, %22, %cst_32 {dimension_numbers = #tpu.dot_dimension_numbers<[1], [0], [0], [1], [0, 0, 1, 1], [], []>} : vector<8x256xbf16>, vector<256x128xbf16>, vector<8x128xf32> -> vector<8x128xf32>
    %54 = vector.broadcast %23 : vector<1x128xf32> to vector<8x128xf32>
    %55 = arith.addf %53, %54 : vector<8x128xf32>
    %cst_33 = arith.constant dense<0xFF800000> : vector<8xf32>
    %56 = vector.multi_reduction <maximumf>, %55, %cst_33 [1] : vector<8x128xf32> to vector<8xf32>
    %57 = vector.shape_cast %56 : vector<8xf32> to vector<8x1xf32>
    %58 = vector.broadcast %57 : vector<8x1xf32> to vector<8x128xf32>
    %59 = arith.subf %55, %58 : vector<8x128xf32>
    %60 = math.exp %59 : vector<8x128xf32>
    %cst_34 = arith.constant dense<0.000000e+00> : vector<8xf32>
    %61 = vector.multi_reduction <add>, %60, %cst_34 [1] : vector<8x128xf32> to vector<8xf32>
    %62 = vector.shape_cast %61 : vector<8xf32> to vector<8x1xf32>
    %63 = vector.broadcast %62 : vector<8x1xf32> to vector<8x128xf32>
    %64 = arith.divf %60, %63 : vector<8x128xf32>
    %c0_35 = arith.constant 0 : index
    %c0_36 = arith.constant 0 : index
    %65 = vector.load %arg12[%c0_35, %c0_36] : memref<8x128xf32, #tpu.memory_space<vmem>>, vector<8x128xf32>
    tpu.vector_store %arg12[%c0_35, %c0_36], %64 {strides = array<i32>} : memref<8x128xf32, #tpu.memory_space<vmem>>, vector<8x128xf32>,
    return
  }
  func.func @transform_0(%arg0: i32) -> (i32, i32) {
    %c0_i32 = arith.constant 0 : i32
    %c0_i32_0 = arith.constant 0 : i32
    %c0_i32_1 = arith.constant 0 : i32
    return %c0_i32, %c0_i32_0 : i32, i32
  }
  func.func @transform_1(%arg0: i32) -> (i32, i32) {
    %c0_i32 = arith.constant 0 : i32
    %c0_i32_0 = arith.constant 0 : i32
    %c0_i32_1 = arith.constant 0 : i32
    return %c0_i32, %c0_i32_0 : i32, i32
  }
  func.func @transform_2(%arg0: i32) -> (i32, i32) {
    %c0_i32 = arith.constant 0 : i32
    %c0_i32_0 = arith.constant 0 : i32
    %c0_i32_1 = arith.constant 0 : i32
    return %c0_i32, %c0_i32_0 : i32, i32
  }
  func.func @transform_3(%arg0: i32) -> (i32, i32) {
    %c0_i32 = arith.constant 0 : i32
    %c0_i32_0 = arith.constant 0 : i32
    %c0_i32_1 = arith.constant 0 : i32
    return %c0_i32, %c0_i32_0 : i32, i32
  }
  func.func @transform_4(%arg0: i32) -> (i32, i32) {
    %c0_i32 = arith.constant 0 : i32
    %c0_i32_0 = arith.constant 0 : i32
    %c0_i32_1 = arith.constant 0 : i32
    return %c0_i32, %c0_i32_0 : i32, i32
  }
  func.func @transform_5(%arg0: i32) -> (i32, i32) {
    %c0_i32 = arith.constant 0 : i32
    %c0_i32_0 = arith.constant 0 : i32
    %c0_i32_1 = arith.constant 0 : i32
    return %c0_i32, %c0_i32_0 : i32, i32
  }
  func.func @transform_6(%arg0: i32) -> (i32, i32) {
    %c0_i32 = arith.constant 0 : i32
    %c0_i32_0 = arith.constant 0 : i32
    %c0_i32_1 = arith.constant 0 : i32
    return %c0_i32, %c0_i32_0 : i32, i32
  }
  func.func @transform_7(%arg0: i32) -> (i32, i32) {
    %c0_i32 = arith.constant 0 : i32
    %c0_i32_0 = arith.constant 0 : i32
    %c0_i32_1 = arith.constant 0 : i32
    return %c0_i32, %c0_i32_0 : i32, i32
  }
  func.func @transform_8(%arg0: i32) -> (i32, i32) {
    %c0_i32 = arith.constant 0 : i32
    %c0_i32_0 = arith.constant 0 : i32
    %c0_i32_1 = arith.constant 0 : i32
    return %c0_i32, %c0_i32_0 : i32, i32
  }
  func.func @transform_9(%arg0: i32) -> (i32, i32) {
    %c0_i32 = arith.constant 0 : i32
    %c0_i32_0 = arith.constant 0 : i32
    %c0_i32_1 = arith.constant 0 : i32
    return %c0_i32, %c0_i32_0 : i32, i32
  }
  func.func @transform_10(%arg0: i32) -> (i32, i32) {
    %c0_i32 = arith.constant 0 : i32
    %c0_i32_0 = arith.constant 0 : i32
    return %arg0, %c0_i32 : i32, i32
  }
  func.func @transform_11(%arg0: i32) -> (i32, i32) {
    %c0_i32 = arith.constant 0 : i32
    %c0_i32_0 = arith.constant 0 : i32
    return %arg0, %c0_i32 : i32, i32
  }
}

</mosaic_0001>

<bundles_post_ra>
// kernel: network_forward.1
= control target key start
LH: loop header
LB: loop body
LE: loop exit
PB: predicated region body
PF: predicated region fallthrough
CT: control target
= control target key end

     0   :  { %16 = vsyncpa [#allocation3], 0  ;;  %s2366_s0 = inlined_call_operand.vmem [shape: f32[1,32], index: 0, kind: input, shape index: {}]   ;;  %s2367_s1 = inlined_call_operand.hbm [shape: f32[1,32], index: 1, kind: input, shape index: {}]   ;;  %s2368_s2 = inlined_call_operand.hbm [shape: bf16[32,384], index: 2, kind: input, shape index: {}]   ;;  %s2369_s3 = inlined_call_operand.vmem [shape: f32[1,384], index: 3, kind: input, shape index: {}]   ;;  %s2370_s4 = inlined_call_operand.hbm [shape: bf16[384,384], index: 4, kind: input, shape index: {}]   ;;  %s2371_s5 = inlined_call_operand.vmem [shape: f32[1,384], index: 5, kind: input, shape index: {}]   ;;  %s2372_s6 = inlined_call_operand.hbm [shape: bf16[384,256], index: 6, kind: input, shape index: {}]   ;;  %s2373_s7 = inlined_call_operand.vmem [shape: f32[1,256], index: 7, kind: input, shape index: {}]   ;;  %s2374_s8 = inlined_call_operand.hbm [shape: bf16[256,128], index: 8, kind: input, shape index: {}]   ;;  %s2375_s9 = inlined_call_operand.vmem [shape: f32[1,128], index: 9, kind: input, shape index: {}]   ;;  %s2376_s10 = inlined_call_operand.hbm [shape: f32[8,32], index: 10, kind: input, shape index: {}]   ;;  %s2377_s11 = inlined_call_operand.vmem [shape: f32[8,128], index: 11, kind: output, shape index: {}]  }
   0x1   :  { %17 = vsyncpa [#allocation5], 0 }
   0x2   :  { %18 = vsyncpa [#allocation8], 0 }
   0x3   :  { %19 = vsyncpa [#allocation11], 0  ;;  %s2146_s17 = smov [#allocation4]   ;;  %s2006_s21 = scalar_lea.hbm %s2368_s2, 768 }
   0x4   :  { %s37_s18 = sshll.u32 %s2146_s17, 4  ;;  %p2007_p0 = scmp.ne.s32.totalorder %s2368_s2, %s2006_s21  ;;  %s38_s18 = int_to_ptr.vmem [resolvable:$true] %s37_s18 }
   0x5   :  { %p2010_p1 = scmp.lt.u32.totalorder %s2006_s21, %s2368_s2 }
   0x7   :  { %p2012_p2 = pnand %p2010_p1, %p2007_p0 }
   0x9   :  { %2015 = shalt.err (!%p2012_p2)
}
   0xa   :  { %s2016_s26 = scalar_lea.vmem %s38_s18, 768  ;;  %p2021_p4 = scmp.lt.s32.totalorder %s38_s18, %s38_s18 }
   0xb   :  { %p2017_p3 = scmp.ne.s32.totalorder %s38_s18, %s2016_s26  ;;  %p2022_p5 = scmp.lt.s32.totalorder %s2016_s26, %s2016_s26 }
   0xd   :  { %p2023_p6 = por %p2022_p5, %p2021_p4 }
   0xf   :  { %p2024_p7 = pnand %p2023_p6, %p2017_p3 }
  0x11   :  { %2027 = shalt.err (!%p2024_p7)
}
  0x12   :  { %s2147_s27 = smov 192   ;;  %s2148_s28 = smov 12  }
  0x13   :  { %43 = dma.hbm_to_vmem [thread:$0]  %s2368_s2, 768, %s38_s18, [#allocation5], %s2147_s27, %s2147_s27, %s2148_s28  }
  0x14   :  { %s2149_s12 = smov [#allocation7]   ;;  %s2028_s16 = scalar_lea.hbm %s2372_s6, 6144 }
  0x15   :  { %s65_s13 = sshll.u32 %s2149_s12, 4  ;;  %p2029_p8 = scmp.ne.s32.totalorder %s2372_s6, %s2028_s16  ;;  %s66_s13 = int_to_ptr.vmem [resolvable:$true] %s65_s13 }
  0x16   :  { %p2032_p9 = scmp.lt.u32.totalorder %s2028_s16, %s2372_s6 }
  0x18   :  { %p2034_p10 = pnand %p2032_p9, %p2029_p8 }
  0x1a   :  { %2037 = shalt.err (!%p2034_p10)
}
  0x1b   :  { %s2038_s22 = scalar_lea.vmem %s66_s13, 6144  ;;  %p2043_p12 = scmp.lt.s32.totalorder %s66_s13, %s66_s13 }
  0x1c   :  { %p2039_p11 = scmp.ne.s32.totalorder %s66_s13, %s2038_s22  ;;  %p2044_p13 = scmp.lt.s32.totalorder %s2038_s22, %s2038_s22 }
  0x1e   :  { %p2045_p0 = por %p2044_p13, %p2043_p12 }
  0x20   :  { %p2046_p1 = pnand %p2045_p0, %p2039_p11 }
  0x22   :  { %2049 = shalt.err (!%p2046_p1)
}
  0x23   :  { %s2150_s2 = smov 128   ;;  %s2151_s18 = smov 8  }
  0x24   :  { %71 = dma.hbm_to_vmem [thread:$0]  %s2372_s6, 6144, %s66_s13, [#allocation8], %s2150_s2, %s2150_s2, %s2151_s18  }
  0x25   :  { %s2152_s25 = smov [#allocation2]   ;;  %s2153_s29 = smov [#allocation6]  }
  0x26   :  { %s28_s26 = sshll.u32 %s2152_s25, 4  ;;  %s51_s30 = sshll.u32 %s2153_s29, 4  ;;  %s29_s26 = int_to_ptr.vmem [resolvable:$true] %s28_s26  ;;  %s2248_s30 = int_to_ptr.vmem [resolvable:$true] %s51_s30 }
  0x27   :  { %s2050_s15 = scalar_lea.hbm %s2367_s1, 16 }
  0x28   :  { %p2051_p2 = scmp.ne.s32.totalorder %s2367_s1, %s2050_s15  ;;  %p2054_p3 = scmp.lt.u32.totalorder %s2050_s15, %s2367_s1 }
  0x2a   :  { %p2056_p4 = pnand %p2054_p3, %p2051_p2 }
  0x2c   :  { %2059 = shalt.err (!%p2056_p4)
}
  0x2d   :  { %s2060_s6 = scalar_lea.vmem %s29_s26, 16  ;;  %s2064_s13 = scalar_lea.vmem %s29_s26, 32 }
  0x2e   :  { %p2061_p5 = scmp.ne.s32.totalorder %s29_s26, %s2060_s6  ;;  %p2065_p6 = scmp.lt.s32.totalorder %s29_s26, %s29_s26 }
  0x2f   :  { %p2066_p7 = scmp.lt.s32.totalorder %s2064_s13, %s2060_s6 }
  0x31   :  { %p2067_p8 = por %p2066_p7, %p2065_p6 }
  0x33   :  { %p2068_p9 = pnand %p2067_p8, %p2061_p5 }
  0x35   :  { %2071 = shalt.err (!%p2068_p9)
}
  0x36   :  { %31 = dma.hbm_to_vmem [thread:$0]  %s2367_s1, 16, %s29_s26, [#allocation3]  }
  0x37   :  { %s2072_s23 = scalar_lea.hbm %s2370_s4, 9216 }
  0x38   :  { %p2073_p10 = scmp.ne.s32.totalorder %s2370_s4, %s2072_s23  ;;  %p2076_p11 = scmp.lt.u32.totalorder %s2072_s23, %s2370_s4 }
  0x3a   :  { %p2078_p12 = pnand %p2076_p11, %p2073_p10 }
  0x3c   :  { %2081 = shalt.err (!%p2078_p12)
}
  0x3d   :  { %s2082_s14 = scalar_lea.vmem %s2248_s30, 9216  ;;  %p2087_p0 = scmp.lt.s32.totalorder %s2248_s30, %s2248_s30 }
  0x3e   :  { %p2083_p13 = scmp.ne.s32.totalorder %s2248_s30, %s2082_s14  ;;  %p2088_p1 = scmp.lt.s32.totalorder %s2082_s14, %s2082_s14 }
  0x40   :  { %p2089_p2 = por %p2088_p1, %p2087_p0 }
  0x42   :  { %p2090_p3 = pnand %p2089_p2, %p2083_p13 }
  0x44   :  { %2093 = shalt.err (!%p2090_p3)
}
  0x45   :  { %57 = dma.hbm_to_vmem [thread:$0]  %s2370_s4, 9216, %s2248_s30, [#allocation5], %s2147_s27, %s2147_s27, %s2148_s28  }
  0x46   :  { %s2154_s15 = smov [#allocation9]   ;;  %s2094_s20 = scalar_lea.hbm %s2374_s8, 2048 }
  0x47   :  { %s79_s16 = sshll.u32 %s2154_s15, 4  ;;  %p2095_p4 = scmp.ne.s32.totalorder %s2374_s8, %s2094_s20  ;;  %s80_s16 = int_to_ptr.vmem [resolvable:$true] %s79_s16 }
  0x48   :  { %p2098_p5 = scmp.lt.u32.totalorder %s2094_s20, %s2374_s8 }
  0x4a   :  { %p2100_p6 = pnand %p2098_p5, %p2095_p4 }
  0x4c   :  { %2103 = shalt.err (!%p2100_p6)
}
  0x4d   :  { %s2104_s2 = scalar_lea.vmem %s80_s16, 2048  ;;  %p2109_p8 = scmp.lt.s32.totalorder %s80_s16, %s80_s16 }
  0x4e   :  { %p2105_p7 = scmp.ne.s32.totalorder %s80_s16, %s2104_s2  ;;  %p2110_p9 = scmp.lt.s32.totalorder %s2104_s2, %s2104_s2 }
  0x50   :  { %p2111_p10 = por %p2110_p9, %p2109_p8 }
  0x52   :  { %p2112_p11 = pnand %p2111_p10, %p2105_p7 }
  0x54   :  { %2115 = shalt.err (!%p2112_p11)
}
  0x55   :  { %s2155_s4 = smov 64   ;;  %s2156_s27 = smov 4  }
  0x56   :  { %85 = dma.hbm_to_vmem [thread:$0]  %s2374_s8, 2048, %s80_s16, [#allocation8], %s2155_s4, %s2155_s4, %s2156_s27  }
  0x57   :  { %s2157_s18 = smov [#allocation10]   ;;  %s2116_s29 = scalar_lea.hbm %s2376_s10, 128 }
  0x58   :  { %s94_s23 = sshll.u32 %s2157_s18, 4  ;;  %p2117_p12 = scmp.ne.s32.totalorder %s2376_s10, %s2116_s29  ;;  %s95_s23 = int_to_ptr.vmem [resolvable:$true] %s94_s23 }
  0x59   :  { %p2120_p13 = scmp.lt.u32.totalorder %s2116_s29, %s2376_s10 }
  0x5b   :  { %p2122_p0 = pnand %p2120_p13, %p2117_p12 }
  0x5d   :  { %2125 = shalt.err (!%p2122_p0)
}
  0x5e   :  { %s2126_s15 = scalar_lea.vmem %s95_s23, 128  ;;  %p2131_p2 = scmp.lt.s32.totalorder %s95_s23, %s95_s23 }
  0x5f   :  { %p2127_p1 = scmp.ne.s32.totalorder %s95_s23, %s2126_s15  ;;  %p2132_p3 = scmp.lt.s32.totalorder %s2126_s15, %s2126_s15 }
  0x61   :  { %p2133_p4 = por %p2132_p3, %p2131_p2 }
  0x63   :  { %p2134_p5 = pnand %p2133_p4, %p2127_p1 }
  0x65   :  { %2137 = shalt.err (!%p2134_p5)
}
  0x66   :  { %97 = dma.hbm_to_vmem [thread:$0]  %s2376_s10, 128, %s95_s23, [#allocation11]  }
  0x67   :  { %2138 = dma.done.wait [#allocation3], 16  }
  0x68   :  { %2139 = vsyncadd [#allocation3], 4294967280 }
  0x69   :  { %2140 = dma.done.wait [#allocation5], 9984  }
  0x6a   :  { %2141 = vsyncadd [#allocation5], 4294957312 }
  0x6b   :  { %2142 = dma.done.wait [#allocation8], 8192  }
  0x6c   :  { %2143 = vsyncadd [#allocation8], 4294959104 }
  0x6d   :  { %2144 = dma.done.wait [#allocation11], 128  }
  0x6e   :  { %2145 = vsyncadd [#allocation11], 4294967168  ;;  %v2158_v0 = vmov 0   ;;  %v1808_v1 = vld [vmem:[#allocation4 + $0x4] ss:$12 sps:$4 sm:$0xff]   ;;  %vm118_vm0 = vcmask 261120   ;;  %v335_v33 = vlaneseq }
  0x6f   :  { %432 = vmatprep.mubr.bf16.mxu0 %v2158_v0  ;;  %v1810_v2 = vld [vmem:[#allocation4] ss:$12 sps:$4 sm:$0xff]   ;;  %400 = vmatprep.subr.bf16.mxu0 %v1808_v1  ;;  %v1811_v3 = vld [vmem:[#allocation4 + $0x1c] ss:$12 sps:$4 sm:$0xff]   ;;  %v117_v4 = vld [vmem:[#allocation10] sm:$0xff]  ;;  %v2159_v14 = vmov 0.0  }
  0x70   :  { %401 = vmatpush1.bf16.msra.mxu0 %v1810_v2  ;;  %v1813_v5 = vld [vmem:[#allocation4 + $0x18] ss:$12 sps:$4 sm:$0xff]   ;;  %v119_v6 = vsel %vm118_vm0, %v117_v4, 0.0  ;;  %v127_v7 = vmul.f32 %v117_v4, %v117_v4  ;;  %v1848_v28 = vld [vmem:[#allocation6 + $0xe0] ss:$12 sps:$4 sm:$0xff]   ;;  %v2310_v37 = vshrl.u32 %v335_v33, 7 }
  0x71   :  { %402 = vmatprep.subr.bf16.mxu0 %v1811_v3  ;;  %v120_v8 = vrot.slane %v119_v6, 4  ;;  %v1843_v25 = vld [vmem:[#allocation6 + $0xc8] ss:$12 sps:$4 sm:$0xff]   ;;  %v1849_v30 = vld [vmem:[#allocation6 + $0x20] ss:$12 sps:$4 sm:$0xff]   ;;  %vm2160_vm1 = vmmov 0  }
  0x72   :  { %v128_v9 = vsel %vm118_vm0, %v127_v7, 0.0  ;;  %v1844_v26 = vld [vmem:[#allocation6 + $0x8] ss:$12 sps:$4 sm:$0xff]   ;;  %1700 = vmatprep.subr.bf16.mxu1 %v1843_v25  ;;  %v1853_v32 = vld [vmem:[#allocation6 + $0xf8] ss:$12 sps:$4 sm:$0xff]   ;;  %v2316_v41 = vsub.s32 0, %v2310_v37 }
  0x73   :  { %v121_v10 = vadd.f32 %v120_v8, %v119_v6  ;;  %v129_v11 = vrot.slane %v128_v9, 4  ;;  %1701 = vmatpush3.bf16.msra.mxu1 %v1844_v26  ;;  %v1854_v34 = vld [vmem:[#allocation6 + $0x38] ss:$12 sps:$4 sm:$0xff]   ;;  %v1858_v35 = vld [vmem:[#allocation6 + $0x110] ss:$12 sps:$4 sm:$0xff]  }
  0x74   :  { %403 = vmatpush1.bf16.msra.mxu0 %v1813_v5  ;;  %1702 = vmatprep.subr.bf16.mxu1 %v1848_v28  ;;  %v1859_v36 = vld [vmem:[#allocation6 + $0x50] ss:$12 sps:$4 sm:$0xff]   ;;  %v1863_v38 = vld [vmem:[#allocation6 + $0x128] ss:$12 sps:$4 sm:$0xff]   ;;  %v139_v40 = vld [vmem:[%s2366_s0] sm:$0x1] }
  0x75   :  { %v122_v12 = vrot.slane %v121_v10, 2  ;;  %v130_v13 = vadd.f32 %v129_v11, %v128_v9  ;;  %1753 = vmatprep.subr.bf16.mxu0 %v2159_v14  ;;  %v1864_v39 = vld [vmem:[#allocation6 + $0x68] ss:$12 sps:$4 sm:$0xff]   ;;  %v1868_v42 = vld [vmem:[#allocation6 + $0x140] ss:$12 sps:$4 sm:$0xff]  }
  0x76   :  { %v140_v44 = vld [vmem:[#allocation2] sm:$0x1]  ;;  %v1814_v52 = vld [vmem:[#allocation4 + $0x8] ss:$12 sps:$4 sm:$0xff]   ;;  %v1815_v55 = vld [vmem:[#allocation4 + $0x20] ss:$12 sps:$4 sm:$0xff]  }
  0x77   :  { %v123_v15 = vadd.f32 %v122_v12, %v121_v10  ;;  %v131_v16 = vrot.slane %v130_v13, 2  ;;  %1703 = vmatpush3.bf16.msra.mxu1 %v1849_v30  ;;  %v1869_v45 = vld [vmem:[#allocation6 + $0x80] ss:$12 sps:$4 sm:$0xff]   ;;  %v1818_v56 = vld [vmem:[#allocation6 + $0x4] ss:$12 sps:$4 sm:$0xff]  }
  0x78   :  { %1704 = vmatprep.subr.bf16.mxu1 %v1853_v32  ;;  %v1816_v57 = vld [vmem:[#allocation6] ss:$12 sps:$4 sm:$0xff]   ;;  %v1821_v58 = vld [vmem:[#allocation6 + $0x1c] ss:$12 sps:$4 sm:$0xff]   ;;  %v1819_v59 = vld [vmem:[#allocation6 + $0x18] ss:$12 sps:$4 sm:$0xff]  }
  0x79   :  { %v124_v17 = vrot.slane %v123_v15, 1  ;;  %v132_v18 = vadd.f32 %v131_v16, %v130_v13  ;;  %v1824_v60 = vld [vmem:[#allocation6 + $0x34] ss:$12 sps:$4 sm:$0xff]   ;;  %v1822_v61 = vld [vmem:[#allocation6 + $0x30] ss:$12 sps:$4 sm:$0xff]   ;;  %v2330_v32 = vsub.s32 1, %v2310_v37 }
  0x7a   :  { %v1827_v62 = vld [vmem:[#allocation6 + $0x4c] ss:$12 sps:$4 sm:$0xff]   ;;  %v1825_v63 = vld [vmem:[#allocation6 + $0x48] ss:$12 sps:$4 sm:$0xff]   ;;  %v1830_v1 = vld [vmem:[#allocation6 + $0x64] ss:$12 sps:$4 sm:$0xff]  }
  0x7b   :  { %v125_v19 = vadd.f32 %v124_v17, %v123_v15  ;;  %v133_v20 = vrot.slane %v132_v18, 1  ;;  %1705 = vmatpush3.bf16.msra.mxu1 %v1854_v34  ;;  %v1828_v2 = vld [vmem:[#allocation6 + $0x60] ss:$12 sps:$4 sm:$0xff]   ;;  %v1833_v3 = vld [vmem:[#allocation6 + $0x7c] ss:$12 sps:$4 sm:$0xff]  }
  0x7c   :  { %1706 = vmatprep.subr.bf16.mxu1 %v1858_v35  ;;  %v1836_v5 = vld [vmem:[#allocation6 + $0x94] ss:$12 sps:$4 sm:$0xff]   ;;  %v1834_v6 = vld [vmem:[#allocation6 + $0x90] ss:$12 sps:$4 sm:$0xff]   ;;  %v1839_v7 = vld [vmem:[#allocation6 + $0xac] ss:$12 sps:$4 sm:$0xff]  }
  0x7d   :  { %v126_v21 = vmul.f32 0.125, %v125_v19  ;;  %v134_v22 = vadd.f32 %v133_v20, %v132_v18  ;;  %v1837_v8 = vld [vmem:[#allocation6 + $0xa8] ss:$12 sps:$4 sm:$0xff]   ;;  %v1842_v9 = vld [vmem:[#allocation6 + $0xc4] ss:$12 sps:$4 sm:$0xff]  }
  0x7e   :  { %v1840_v10 = vld [vmem:[#allocation6 + $0xc0] ss:$12 sps:$4 sm:$0xff]   ;;  %v1847_v11 = vld [vmem:[#allocation6 + $0xdc] ss:$12 sps:$4 sm:$0xff]   ;;  %v1845_v12 = vld [vmem:[#allocation6 + $0xd8] ss:$12 sps:$4 sm:$0xff]  }
  0x7f   :  { %v135_v23 = vmul.f32 0.125, %v134_v22  ;;  %v136_v24 = vmul.f32 %v126_v21, %v126_v21  ;;  %1707 = vmatpush3.bf16.msra.mxu1 %v1859_v36  ;;  %v1852_v13 = vld [vmem:[#allocation6 + $0xf4] ss:$12 sps:$4 sm:$0xff]   ;;  %v1850_v15 = vld [vmem:[#allocation6 + $0xf0] ss:$12 sps:$4 sm:$0xff]  }
  0x80   :  { %1708 = vmatprep.subr.bf16.mxu1 %v1863_v38  ;;  %v1857_v16 = vld [vmem:[#allocation6 + $0x10c] ss:$12 sps:$4 sm:$0xff]   ;;  %v1855_v17 = vld [vmem:[#allocation6 + $0x108] ss:$12 sps:$4 sm:$0xff]   ;;  %v1862_v18 = vld [vmem:[#allocation6 + $0x124] ss:$12 sps:$4 sm:$0xff]  }
  0x81   :  { %v137_v27 = vsub.f32 %v135_v23, %v136_v24  ;;  %v1860_v19 = vld [vmem:[#allocation6 + $0x120] ss:$12 sps:$4 sm:$0xff]   ;;  %v1867_v20 = vld [vmem:[#allocation6 + $0x13c] ss:$12 sps:$4 sm:$0xff]   ;;  %v1873_v23 = vld [vmem:[#allocation6 + $0x158] ss:$12 sps:$4 sm:$0xff]  }
  0x82   :  { %v1872_v22 = vld [vmem:[#allocation6 + $0x154] ss:$12 sps:$4 sm:$0xff]   ;;  %v1870_v24 = vld [vmem:[#allocation6 + $0x150] ss:$12 sps:$4 sm:$0xff]   ;;  %v1874_v25 = vld [vmem:[#allocation6 + $0x98] ss:$12 sps:$4 sm:$0xff]  }
  0x83   :  { %v138_v29 = vmax.f32 %v137_v27, 0.0  ;;  %1709 = vmatpush3.bf16.msra.mxu1 %v1864_v39  ;;  %v1877_v26 = vld [vmem:[#allocation6 + $0x16c] ss:$12 sps:$4 sm:$0xff]   ;;  %v1878_v27 = vld [vmem:[#allocation6 + $0x170] ss:$12 sps:$4 sm:$0xff]  }
  0x84   :  { %1710 = vmatprep.subr.bf16.mxu1 %v1868_v42  ;;  %v1875_v28 = vld [vmem:[#allocation6 + $0x168] ss:$12 sps:$4 sm:$0xff]   ;;  %v1882_v30 = vld [vmem:[#allocation6 + $0x184] ss:$12 sps:$4 sm:$0xff]  }
  0x85   :  { %v329_v31 = vadd.f32 1e-05, %v138_v29  ;;  %v1879_v29 = vld [vmem:[#allocation6 + $0xb0] ss:$12 sps:$4 sm:$0xff]  }
  0x87   :  { %2000 = vrsqrt.f32 %v329_v31  ;;  %1711 = vmatpush3.bf16.msra.mxu1 %v1869_v45  ;;  %v149_v31 = vld [vmem:[%s2369_s3] sm:$0x7] }
  0x88   :  { %1712 = vmatprep.subr.bf16.mxu1 %v1873_v23  ;;  %v353_v33 = vrot.slane %v149_v31, %v2316_v41  ;;  %v357_v34 = vrot.slane %v149_v31, %v2330_v32  ;;  %v1923_v23 = vld [vmem:[#allocation7 + $0x34] ss:$8 sps:$4 sm:$0xff]  }
  0x8b   :  { %1713 = vmatpush3.bf16.msra.mxu1 %v1874_v25  ;;  %v1924_v25 = vld [vmem:[#allocation7 + $0x40] ss:$8 sps:$4 sm:$0xff]  }
  0x8c   :  { %1714 = vmatprep.subr.bf16.mxu1 %v1878_v27  ;;  %v1927_v27 = vld [vmem:[#allocation7 + $0x50] ss:$8 sps:$4 sm:$0xff]  }
  0x8f   :  { %1715 = vmatpush3.bf16.msra.mxu1 %v1879_v29  ;;  %v1930_v29 = vld [vmem:[#allocation7 + $0x60] ss:$8 sps:$4 sm:$0xff]  }
  0x90   :  { %1761 = vmatprep.subr.bf16.mxu1 %v2159_v14 }
  0x91   :  { %v2001_v43 = vpop.eup %2000 }
  0x92   :  { %v331_v46 = vmul.f32 %v2001_v43, %v139_v40 }
  0x94   :  { %v332_v47 = vmul.f32 %v331_v46, %v126_v21  ;;  %v338_v48 = vrot.slane %v331_v46, %v2316_v41  ;;  %v1865_v21 = vld [vmem:[#allocation6 + $0x138] ss:$12 sps:$4 sm:$0xff]   ;;  %v1880_v46 = vld [vmem:[#allocation6 + $0x180] ss:$12 sps:$4 sm:$0xff]  }
  0x96   :  { %v333_v49 = vsub.f32 %v140_v44, %v332_v47  ;;  %v340_v50 = vmul.f32 %v338_v48, %v117_v4  ;;  %v1831_v4 = vld [vmem:[#allocation6 + $0x78] ss:$12 sps:$4 sm:$0xff]   ;;  %v1883_v47 = vld [vmem:[#allocation6 + $0x188] ss:$12 sps:$4 sm:$0xff]  }
  0x98   :  { %v345_v51 = vrot.slane %v333_v49, %v2316_v41  ;;  %v1886_v49 = vld [vmem:[#allocation6 + $0x19c] ss:$12 sps:$4 sm:$0xff]  }
  0x9a   :  { %v347_v53 = vadd.f32 %v345_v51, %v340_v50 }
  0x9c   :  { %v348_v54 = vpack.c.bf16 %v347_v53, %v347_v53  ;;  %v1887_v53 = vld [vmem:[#allocation6 + $0x1a0] ss:$12 sps:$4 sm:$0xff]  }
  0x9e   :  { %1558 = vmatmul.mubr.msk.bf16.vlgmr.msra.gmra.mrb[0].mxu0 %vm118_vm0, %v348_v54 }
  0x9f   :  { %1754 = vmatpush3.bf16.msra.mxu0 %v1814_v52  ;;  %1757 = vmatprep.mubr.msk.bf16.mxu0 %vm2160_vm1, %v2159_v14  ;;  %v1884_v52 = vld [vmem:[#allocation6 + $0x198] ss:$12 sps:$4 sm:$0xff]  }
  0xa0   :  { %1755 = vmatprep.subr.bf16.mxu0 %v2159_v14 }
  0xa3   :  { %1756 = vmatpush3.bf16.msra.mxu0 %v1815_v55  ;;  %v1890_v55 = vld [vmem:[#allocation6 + $0x1b4] ss:$12 sps:$4 sm:$0xff]  }
  0xa4   :  { %887 = vmatprep.subr.bf16.mxu0 %v1818_v56 }
  0xa6   :  { %1758 = vmatmul.mubr.msk.bf16.vlgmr.msra.gmra.mrb[4].mxu0 %vm118_vm0, %v348_v54 }
  0xa7   :  { %888 = vmatpush1.bf16.msra.mxu0 %v1816_v57  ;;  %v1888_v57 = vld [vmem:[#allocation6 + $0x1b0] ss:$12 sps:$4 sm:$0xff]  }
  0xa8   :  { %889 = vmatprep.subr.bf16.mxu0 %v1821_v58  ;;  %v1891_v58 = vld [vmem:[#allocation6 + $0x1b8] ss:$12 sps:$4 sm:$0xff]  }
  0xab   :  { %890 = vmatpush1.bf16.msra.mxu0 %v1819_v59  ;;  %v1894_v59 = vld [vmem:[#allocation6 + $0x1cc] ss:$12 sps:$4 sm:$0xff]  }
  0xac   :  { %891 = vmatprep.subr.bf16.mxu0 %v1824_v60  ;;  %v1892_v60 = vld [vmem:[#allocation6 + $0x1c8] ss:$12 sps:$4 sm:$0xff]  }
  0xaf   :  { %892 = vmatpush1.bf16.msra.mxu0 %v1822_v61  ;;  %v1895_v61 = vld [vmem:[#allocation6 + $0x1d0] ss:$12 sps:$4 sm:$0xff]  }
  0xb0   :  { %893 = vmatprep.subr.bf16.mxu0 %v1827_v62  ;;  %v1898_v62 = vld [vmem:[#allocation6 + $0x1e4] ss:$12 sps:$4 sm:$0xff]  }
  0xb3   :  { %894 = vmatpush1.bf16.msra.mxu0 %v1825_v63  ;;  %v360_v63 = vsub.s32 2, %v2310_v37 }
  0xb4   :  { %895 = vmatprep.subr.bf16.mxu0 %v1830_v1  ;;  %v1896_v1 = vld [vmem:[#allocation6 + $0x1e0] ss:$12 sps:$4 sm:$0xff]  }
  0xb7   :  { %896 = vmatpush1.bf16.msra.mxu0 %v1828_v2  ;;  %v1899_v2 = vld [vmem:[#allocation6 + $0x1e8] ss:$12 sps:$4 sm:$0xff]  }
  0xb8   :  { %897 = vmatprep.subr.bf16.mxu0 %v1833_v3  ;;  %v1902_v3 = vld [vmem:[#allocation6 + $0x1fc] ss:$12 sps:$4 sm:$0xff]  }
  0xbb   :  { %898 = vmatpush1.bf16.msra.mxu0 %v1831_v4  ;;  %v361_v4 = vrot.slane %v149_v31, %v360_v63  ;;  %v1933_v31 = vld [vmem:[#allocation7 + $0x70] ss:$8 sps:$4 sm:$0xff]  }
  0xbc   :  { %899 = vmatprep.subr.bf16.mxu0 %v1836_v5  ;;  %v1900_v5 = vld [vmem:[#allocation6 + $0x1f8] ss:$12 sps:$4 sm:$0xff]  }
  0xbf   :  { %900 = vmatpush1.bf16.msra.mxu0 %v1834_v6  ;;  %v1903_v6 = vld [vmem:[#allocation6 + $0x200] ss:$12 sps:$4 sm:$0xff]  }
  0xc0   :  { %901 = vmatprep.subr.bf16.mxu0 %v1839_v7  ;;  %v1906_v7 = vld [vmem:[#allocation6 + $0x214] ss:$12 sps:$4 sm:$0xff]  }
  0xc3   :  { %902 = vmatpush1.bf16.msra.mxu0 %v1837_v8 }
  0xc4   :  { %903 = vmatprep.subr.bf16.mxu0 %v1842_v9  ;;  %v1904_v9 = vld [vmem:[#allocation6 + $0x210] ss:$12 sps:$4 sm:$0xff]  }
  0xc7   :  { %904 = vmatpush1.bf16.msra.mxu0 %v1840_v10  ;;  %v1907_v10 = vld [vmem:[#allocation6 + $0x218] ss:$12 sps:$4 sm:$0xff]  }
  0xc8   :  { %905 = vmatprep.subr.bf16.mxu0 %v1847_v11  ;;  %v1910_v11 = vld [vmem:[#allocation6 + $0x22c] ss:$12 sps:$4 sm:$0xff]  }
  0xcb   :  { %906 = vmatpush1.bf16.msra.mxu0 %v1845_v12 }
  0xcc   :  { %907 = vmatprep.subr.bf16.mxu0 %v1852_v13  ;;  %v1908_v13 = vld [vmem:[#allocation6 + $0x228] ss:$12 sps:$4 sm:$0xff]  }
  0xcf   :  { %908 = vmatpush1.bf16.msra.mxu0 %v1850_v15  ;;  %v1911_v15 = vld [vmem:[#allocation6 + $0x230] ss:$12 sps:$4 sm:$0xff]  }
  0xd0   :  { %909 = vmatprep.subr.bf16.mxu0 %v1857_v16  ;;  %v1914_v16 = vld [vmem:[#allocation7 + $0x4] ss:$8 sps:$4 sm:$0xff]  }
  0xd3   :  { %910 = vmatpush1.bf16.msra.mxu0 %v1855_v17 }
  0xd4   :  { %911 = vmatprep.subr.bf16.mxu0 %v1862_v18  ;;  %v1912_v18 = vld [vmem:[#allocation7] ss:$8 sps:$4 sm:$0xff]  }
  0xd7   :  { %912 = vmatpush1.bf16.msra.mxu0 %v1860_v19  ;;  %v1917_v19 = vld [vmem:[#allocation7 + $0x14] ss:$8 sps:$4 sm:$0xff]  }
  0xd8   :  { %913 = vmatprep.subr.bf16.mxu0 %v1867_v20  ;;  %v1915_v20 = vld [vmem:[#allocation7 + $0x10] ss:$8 sps:$4 sm:$0xff]  }
  0xdb   :  { %914 = vmatpush1.bf16.msra.mxu0 %v1865_v21  ;;  %v1920_v21 = vld [vmem:[#allocation7 + $0x24] ss:$8 sps:$4 sm:$0xff]  }
  0xdc   :  { %915 = vmatprep.subr.bf16.mxu0 %v1872_v22  ;;  %v1918_v22 = vld [vmem:[#allocation7 + $0x20] ss:$8 sps:$4 sm:$0xff]  }
  0xdf   :  { %916 = vmatpush1.bf16.msra.mxu0 %v1870_v24  ;;  %v1921_v24 = vld [vmem:[#allocation7 + $0x30] ss:$8 sps:$4 sm:$0xff]  }
  0xe0   :  { %917 = vmatprep.subr.bf16.mxu0 %v1877_v26  ;;  %v1929_v26 = vld [vmem:[#allocation7 + $0x54] ss:$8 sps:$4 sm:$0xff]  }
  0xe3   :  { %918 = vmatpush1.bf16.msra.mxu0 %v1875_v28  ;;  %v1932_v28 = vld [vmem:[#allocation7 + $0x64] ss:$8 sps:$4 sm:$0xff]  }
  0xe4   :  { %928 = vmatprep.subr.bf16.mxu0 %v1882_v30  ;;  %v1935_v30 = vld [vmem:[#allocation7 + $0x74] ss:$8 sps:$4 sm:$0xff]  }
 0x171   :  { %v434_v35 = vpop.f32.mrb[0].mxu0 }
 0x172   :  { %v435_v36 = vadd.f32 %v434_v35, %v353_v33  ;;  %v436_v38 = vpop.f32.mrb[1].mxu0  ;;  %v1938_v33 = vld [vmem:[#allocation7 + $0x84] ss:$8 sps:$4 sm:$0xff]   ;;  %v1941_v35 = vld [vmem:[#allocation7 + $0x94] ss:$8 sps:$4 sm:$0xff]  }
 0x173   :  { %v437_v39 = vadd.f32 %v436_v38, %v357_v34  ;;  %v438_v40 = vpop.f32.mrb[2].mxu0  ;;  %v1936_v34 = vld [vmem:[#allocation7 + $0x80] ss:$8 sps:$4 sm:$0xff]   ;;  %v1944_v38 = vld [vmem:[#allocation7 + $0xa4] ss:$8 sps:$4 sm:$0xff]  }
 0x174   :  { %v481_v42 = vmax.f32 %v435_v36, 0.0  ;;  %v439_v43 = vpop.f32.mrb[3].mxu0  ;;  %v1939_v36 = vld [vmem:[#allocation7 + $0x90] ss:$8 sps:$4 sm:$0xff]   ;;  %v1947_v40 = vld [vmem:[#allocation7 + $0xb4] ss:$8 sps:$4 sm:$0xff]  }
 0x175   :  { %v482_v44 = vmax.f32 %v437_v39, 0.0  ;;  %v1942_v39 = vld [vmem:[#allocation7 + $0xa0] ss:$8 sps:$4 sm:$0xff]   ;;  %v1950_v43 = vld [vmem:[#allocation7 + $0xc4] ss:$8 sps:$4 sm:$0xff]  }
 0x176   :  { %v484_v48 = vpack.c.bf16 %v481_v42, %v481_v42  ;;  %v1945_v42 = vld [vmem:[#allocation7 + $0xb0] ss:$8 sps:$4 sm:$0xff]  }
 0x177   :  { %v485_v45 = vpack.c.bf16 %v482_v44, %v482_v44  ;;  %v1948_v44 = vld [vmem:[#allocation7 + $0xc0] ss:$8 sps:$4 sm:$0xff]  }
 0x179   :  { %919 = vmatprep.mubr.bf16.mxu0 %v485_v45  ;;  %1001 = vmatprep.mubr.bf16.mxu1 %v485_v45  ;;  %v475_v50 = vpop.f32.mrb[4].mxu0  ;;  %v1953_v45 = vld [vmem:[#allocation7 + $0xd4] ss:$8 sps:$4 sm:$0xff]  }
 0x17a   :  { %920 = vmatmul.mubr.bf16.vlgmr.msra.gmra.mrb[8].mxu0 %v484_v48  ;;  %1002 = vmatmul.mubr.bf16.vlgmr.msra.gmra.mrb[0].mxu1 %v484_v48  ;;  %v1759_v51 = vpop.f32.mrb[5].mxu0  ;;  %v476_v8 = vadd.f32 %v475_v50, %v361_v4  ;;  %v1954_v48 = vld [vmem:[#allocation7 + $0xe0] ss:$8 sps:$4 sm:$0xff]   ;;  %v1957_v50 = vld [vmem:[#allocation7 + $0xf0] ss:$8 sps:$4 sm:$0xff]  }
 0x17b   :  { %929 = vmatpush1.bf16.msra.mxu0 %v1880_v46  ;;  %1762 = vmatpush3.bf16.msra.mxu1 %v1883_v47  ;;  %v478_v54 = vpop.f32.mrb[6].mxu0  ;;  %v1951_v46 = vld [vmem:[#allocation7 + $0xd0] ss:$8 sps:$4 sm:$0xff]   ;;  %v1956_v47 = vld [vmem:[#allocation7 + $0xe4] ss:$8 sps:$4 sm:$0xff]  }
 0x17c   :  { %930 = vmatprep.subr.bf16.mxu0 %v1886_v49  ;;  %1763 = vmatprep.subr.bf16.mxu1 %v2159_v14  ;;  %v1760_v56 = vpop.f32.mrb[7].mxu0  ;;  %v483_v12 = vmax.f32 %v476_v8, 0.0  ;;  %v1959_v49 = vld [vmem:[#allocation7 + $0xf4] ss:$8 sps:$4 sm:$0xff]   ;;  %v1962_v51 = vld [vmem:[#allocation7 + $0x104] ss:$8 sps:$4 sm:$0xff]  }
 0x17d   :  { %960 = vmatprep.mubr.bf16.mxu0 %v2158_v0  ;;  %1777 = vmatprep.mubr.msk.bf16.mxu1 %vm2160_vm1, %v2159_v14  ;;  %v1986_v54 = vld [vmem:[#allocation9 + $0x48] sm:$0xff]   ;;  %v1988_v56 = vld [vmem:[#allocation9 + $0x50] sm:$0xff]  }
 0x17e   :  { %v486_v17 = vpack.c.bf16 %v483_v12, %v483_v12 }
 0x17f   :  { %931 = vmatpush1.bf16.msra.mxu0 %v1884_v52  ;;  %1764 = vmatpush3.bf16.msra.mxu1 %v1887_v53  ;;  %v1984_v52 = vld [vmem:[#allocation9 + $0x40] sm:$0xff]  }
 0x180   :  { %932 = vmatprep.subr.bf16.mxu0 %v1890_v55  ;;  %1765 = vmatprep.subr.bf16.mxu1 %v2159_v14  ;;  %v1985_v53 = vld [vmem:[#allocation9] sm:$0xff]   ;;  %v1987_v55 = vld [vmem:[#allocation9 + $0x8] sm:$0xff]  }
 0x183   :  { %933 = vmatpush1.bf16.msra.mxu0 %v1888_v57  ;;  %1766 = vmatpush3.bf16.msra.mxu1 %v1891_v58  ;;  %v1989_v57 = vld [vmem:[#allocation9 + $0x10] sm:$0xff]   ;;  %v1990_v58 = vld [vmem:[#allocation9 + $0x58] sm:$0xff]  }
 0x184   :  { %934 = vmatprep.subr.bf16.mxu0 %v1894_v59  ;;  %1767 = vmatprep.subr.bf16.mxu1 %v2159_v14  ;;  %v1991_v59 = vld [vmem:[#allocation9 + $0x18] sm:$0xff]  }
 0x187   :  { %935 = vmatpush1.bf16.msra.mxu0 %v1892_v60  ;;  %1768 = vmatpush3.bf16.msra.mxu1 %v1895_v61  ;;  %v1992_v60 = vld [vmem:[#allocation9 + $0x60] sm:$0xff]  }
 0x188   :  { %936 = vmatprep.subr.bf16.mxu0 %v1898_v62  ;;  %1769 = vmatprep.subr.bf16.mxu1 %v2159_v14  ;;  %v1993_v61 = vld [vmem:[#allocation9 + $0x20] sm:$0xff]   ;;  %v1994_v62 = vld [vmem:[#allocation9 + $0x68] sm:$0xff]  }
 0x18b   :  { %937 = vmatpush1.bf16.msra.mxu0 %v1896_v1  ;;  %1770 = vmatpush3.bf16.msra.mxu1 %v1899_v2  ;;  %v1995_v1 = vld [vmem:[#allocation9 + $0x28] sm:$0xff]  }
 0x18c   :  { %938 = vmatprep.subr.bf16.mxu0 %v1902_v3  ;;  %1771 = vmatprep.subr.bf16.mxu1 %v2159_v14 }
 0x18f   :  { %939 = vmatpush1.bf16.msra.mxu0 %v1900_v5  ;;  %1772 = vmatpush3.bf16.msra.mxu1 %v1903_v6 }
 0x190   :  { %940 = vmatprep.subr.bf16.mxu0 %v1906_v7  ;;  %1773 = vmatprep.subr.bf16.mxu1 %v2159_v14  ;;  %v246_v7 = vld [vmem:[%s2371_s5] sm:$0x7] }
 0x191   :  { %v499_v8 = vrot.slane %v246_v7, %v360_v63  ;;  %v1960_v63 = vld [vmem:[#allocation7 + $0x100] ss:$8 sps:$4 sm:$0xff]  }
 0x193   :  { %941 = vmatpush1.bf16.msra.mxu0 %v1904_v9  ;;  %1774 = vmatpush3.bf16.msra.mxu1 %v1907_v10  ;;  %v491_v9 = vrot.slane %v246_v7, %v2316_v41  ;;  %v495_v10 = vrot.slane %v246_v7, %v2330_v32 }
 0x194   :  { %942 = vmatprep.subr.bf16.mxu0 %v1910_v11  ;;  %1775 = vmatprep.subr.bf16.mxu1 %v2159_v14  ;;  %v1926_v14 = vld [vmem:[#allocation7 + $0x44] ss:$8 sps:$4 sm:$0xff]  }
 0x197   :  { %943 = vmatpush1.bf16.msra.mxu0 %v1908_v13  ;;  %1776 = vmatpush3.bf16.msra.mxu1 %v1911_v15 }
 0x198   :  { %1306 = vmatprep.subr.bf16.mxu1 %v1914_v16  ;;  %1731 = vmatprep.subr.bf16.mxu0 %v1984_v52 }
 0x19a   :  { %961 = vmatmul.mubr.bf16.vlgmr.msra.gmra.mrb[8].mxu0 %v486_v17  ;;  %1778 = vmatmul.mubr.bf16.vlgmr.msra.gmra.mrb[4].mxu1 %v486_v17 }
 0x19b   :  { %1307 = vmatpush1.bf16.msra.mxu1 %v1912_v18  ;;  %1732 = vmatpush3.bf16.msra.mxu0 %v1985_v53 }
 0x19c   :  { %1308 = vmatprep.subr.bf16.mxu1 %v1917_v19  ;;  %1733 = vmatprep.subr.bf16.mxu0 %v1986_v54 }
 0x19f   :  { %1309 = vmatpush1.bf16.msra.mxu1 %v1915_v20  ;;  %1734 = vmatpush3.bf16.msra.mxu0 %v1987_v55 }
 0x1a0   :  { %1310 = vmatprep.subr.bf16.mxu1 %v1920_v21  ;;  %1735 = vmatprep.subr.bf16.mxu0 %v1988_v56 }
 0x1a3   :  { %1311 = vmatpush1.bf16.msra.mxu1 %v1918_v22  ;;  %1736 = vmatpush3.bf16.msra.mxu0 %v1989_v57 }
 0x1a4   :  { %1312 = vmatprep.subr.bf16.mxu1 %v1923_v23  ;;  %1737 = vmatprep.subr.bf16.mxu0 %v1990_v58 }
 0x1a7   :  { %1313 = vmatpush1.bf16.msra.mxu1 %v1921_v24  ;;  %1738 = vmatpush3.bf16.msra.mxu0 %v1991_v59 }
 0x1a8   :  { %1314 = vmatprep.subr.bf16.mxu1 %v1926_v14  ;;  %1739 = vmatprep.subr.bf16.mxu0 %v1992_v60 }
 0x1ab   :  { %1315 = vmatpush1.bf16.msra.mxu1 %v1924_v25  ;;  %1740 = vmatpush3.bf16.msra.mxu0 %v1993_v61 }
 0x1ac   :  { %1316 = vmatprep.subr.bf16.mxu1 %v1929_v26  ;;  %1741 = vmatprep.subr.bf16.mxu0 %v1994_v62  ;;  %v1965_v26 = vld [vmem:[#allocation7 + $0x114] ss:$8 sps:$4 sm:$0xff]  }
 0x1af   :  { %1317 = vmatpush1.bf16.msra.mxu1 %v1927_v27  ;;  %1742 = vmatpush3.bf16.msra.mxu0 %v1995_v1  ;;  %v1963_v27 = vld [vmem:[#allocation7 + $0x110] ss:$8 sps:$4 sm:$0xff]  }
 0x1b0   :  { %1318 = vmatprep.subr.bf16.mxu1 %v1932_v28  ;;  %v1968_v28 = vld [vmem:[#allocation7 + $0x124] ss:$8 sps:$4 sm:$0xff]  }
 0x1b3   :  { %1319 = vmatpush1.bf16.msra.mxu1 %v1930_v29  ;;  %v1966_v29 = vld [vmem:[#allocation7 + $0x120] ss:$8 sps:$4 sm:$0xff]  }
 0x1b4   :  { %1320 = vmatprep.subr.bf16.mxu1 %v1935_v30  ;;  %v1971_v30 = vld [vmem:[#allocation7 + $0x134] ss:$8 sps:$4 sm:$0xff]  }
 0x1b7   :  { %1321 = vmatpush1.bf16.msra.mxu1 %v1933_v31  ;;  %v1969_v31 = vld [vmem:[#allocation7 + $0x130] ss:$8 sps:$4 sm:$0xff]  }
 0x1b8   :  { %1322 = vmatprep.subr.bf16.mxu1 %v1938_v33  ;;  %v1974_v33 = vld [vmem:[#allocation7 + $0x144] ss:$8 sps:$4 sm:$0xff]  }
 0x1bb   :  { %1323 = vmatpush1.bf16.msra.mxu1 %v1936_v34  ;;  %v1972_v34 = vld [vmem:[#allocation7 + $0x140] ss:$8 sps:$4 sm:$0xff]  }
 0x1bc   :  { %1324 = vmatprep.subr.bf16.mxu1 %v1941_v35  ;;  %v1977_v35 = vld [vmem:[#allocation7 + $0x154] ss:$8 sps:$4 sm:$0xff]  }
 0x1bf   :  { %1325 = vmatpush1.bf16.msra.mxu1 %v1939_v36  ;;  %v1975_v36 = vld [vmem:[#allocation7 + $0x150] ss:$8 sps:$4 sm:$0xff]  }
 0x1c0   :  { %1326 = vmatprep.subr.bf16.mxu1 %v1944_v38  ;;  %v1980_v38 = vld [vmem:[#allocation7 + $0x164] ss:$8 sps:$4 sm:$0xff]  }
 0x1c3   :  { %1327 = vmatpush1.bf16.msra.mxu1 %v1942_v39  ;;  %v1983_v39 = vld [vmem:[#allocation7 + $0x174] ss:$8 sps:$4 sm:$0xff]  }
 0x1c4   :  { %1328 = vmatprep.subr.bf16.mxu1 %v1947_v40  ;;  %v1981_v40 = vld [vmem:[#allocation7 + $0x170] ss:$8 sps:$4 sm:$0xff]  }
 0x1c7   :  { %1329 = vmatpush1.bf16.msra.mxu1 %v1945_v42 }
 0x1c8   :  { %1330 = vmatprep.subr.bf16.mxu1 %v1950_v43 }
 0x1cb   :  { %1331 = vmatpush1.bf16.msra.mxu1 %v1948_v44  ;;  %v1996_v44 = vld [vmem:[#allocation9 + $0x70] sm:$0xff]  }
 0x1cc   :  { %1332 = vmatprep.subr.bf16.mxu1 %v1953_v45  ;;  %v1997_v45 = vld [vmem:[#allocation9 + $0x30] sm:$0xff]   ;;  %1743 = vmatprep.subr.bf16.mxu0 %v1996_v44 }
 0x1cd   :  { %1744 = vmatpush3.bf16.msra.mxu0 %v1997_v45 }
 0x1cf   :  { %1333 = vmatpush1.bf16.msra.mxu1 %v1951_v46  ;;  %v1998_v46 = vld [vmem:[#allocation9 + $0x78] sm:$0xff]  }
 0x1d0   :  { %1334 = vmatprep.subr.bf16.mxu1 %v1956_v47  ;;  %v1999_v47 = vld [vmem:[#allocation9 + $0x38] sm:$0xff]   ;;  %1745 = vmatprep.subr.bf16.mxu0 %v1998_v46 }
 0x1d1   :  { %1746 = vmatpush3.bf16.msra.mxu0 %v1999_v47 }
 0x1d3   :  { %1335 = vmatpush1.bf16.msra.mxu1 %v1954_v48  ;;  %v295_v48 = vld [vmem:[%s2373_s7] sm:$0x3] }
 0x1d4   :  { %1336 = vmatprep.subr.bf16.mxu1 %v1959_v49  ;;  %v1059_v49 = vrot.slane %v295_v48, %v2316_v41  ;;  %v1680_v41 = vld [vmem:[%s2375_s9] ss:$0 sm:$0xff] }
 0x1d7   :  { %1337 = vmatpush1.bf16.msra.mxu1 %v1957_v50  ;;  %v1063_v50 = vrot.slane %v295_v48, %v2330_v32 }
 0x1d8   :  { %1347 = vmatprep.subr.bf16.mxu1 %v1962_v51 }
 0x24d   :  { %v1716_v2 = vpop.f32.mrb[0].mxu1 }
 0x24e   :  { %v1717_v3 = vpop.f32.mrb[1].mxu1 }
 0x24f   :  { %v1718_v4 = vadd.f32 %v1717_v3, %v1716_v2  ;;  %v1719_v5 = vpop.f32.mrb[2].mxu1 }
 0x250   :  { %v1720_v6 = vpop.f32.mrb[3].mxu1 }
 0x251   :  { %v1004_v11 = vadd.f32 %v1718_v4, %v499_v8 }
 0x26d   :  { %v962_v12 = vpop.f32.mrb[8].mxu0  ;;  %v1043_v13 = vpop.f32.mrb[4].mxu1 }
 0x26e   :  { %v1781_v15 = vadd.f32 %v962_v12, %v491_v9  ;;  %v1044_v16 = vadd.f32 %v1043_v13, %v1004_v11  ;;  %v964_v17 = vpop.f32.mrb[9].mxu0  ;;  %v1779_v18 = vpop.f32.mrb[5].mxu1 }
 0x26f   :  { %v1782_v19 = vadd.f32 %v964_v17, %v495_v10  ;;  %v966_v20 = vpop.f32.mrb[10].mxu0  ;;  %v1046_v21 = vpop.f32.mrb[6].mxu1 }
 0x270   :  { %v1049_v22 = vmax.f32 %v1781_v15, 0.0  ;;  %v967_v23 = vpop.f32.mrb[11].mxu0  ;;  %v1780_v24 = vpop.f32.mrb[7].mxu1  ;;  %v1051_v42 = vmax.f32 %v1044_v16, 0.0 }
 0x271   :  { %v1050_v14 = vmax.f32 %v1782_v19, 0.0 }
 0x272   :  { %v1052_v25 = vpack.c.bf16 %v1049_v22, %v1049_v22  ;;  %v1054_v43 = vpack.c.bf16 %v1051_v42, %v1051_v42 }
 0x273   :  { %v1053_v37 = vpack.c.bf16 %v1050_v14, %v1050_v14 }
 0x275   :  { %1338 = vmatprep.mubr.bf16.mxu1 %v1053_v37 }
 0x276   :  { %1339 = vmatmul.mubr.bf16.vlgmr.msra.gmra.mrb[8].mxu1 %v1052_v25 }
 0x277   :  { %1348 = vmatpush1.bf16.msra.mxu1 %v1960_v63  ;;  %1379 = vmatprep.mubr.bf16.mxu1 %v2158_v0  ;;  %v1978_v0 = vld [vmem:[#allocation7 + $0x160] ss:$8 sps:$4 sm:$0xff]  }
 0x278   :  { %1349 = vmatprep.subr.bf16.mxu1 %v1965_v26 }
 0x27b   :  { %1350 = vmatpush1.bf16.msra.mxu1 %v1963_v27 }
 0x27c   :  { %1351 = vmatprep.subr.bf16.mxu1 %v1968_v28 }
 0x27f   :  { %1352 = vmatpush1.bf16.msra.mxu1 %v1966_v29 }
 0x280   :  { %1353 = vmatprep.subr.bf16.mxu1 %v1971_v30 }
 0x283   :  { %1354 = vmatpush1.bf16.msra.mxu1 %v1969_v31 }
 0x284   :  { %1355 = vmatprep.subr.bf16.mxu1 %v1974_v33 }
 0x287   :  { %1356 = vmatpush1.bf16.msra.mxu1 %v1972_v34 }
 0x288   :  { %1357 = vmatprep.subr.bf16.mxu1 %v1977_v35 }
 0x28b   :  { %1358 = vmatpush1.bf16.msra.mxu1 %v1975_v36 }
 0x28c   :  { %1359 = vmatprep.subr.bf16.mxu1 %v1980_v38 }
 0x28f   :  { %1360 = vmatpush1.bf16.msra.mxu1 %v1978_v0 }
 0x290   :  { %1361 = vmatprep.subr.bf16.mxu1 %v1983_v39 }
 0x293   :  { %1362 = vmatpush1.bf16.msra.mxu1 %v1981_v40 }
 0x296   :  { %1380 = vmatmul.mubr.bf16.vlgmr.msra.gmra.mrb[8].mxu1 %v1054_v43 }
 0x369   :  { %v1381_v51 = vpop.f32.mrb[8].mxu1 }
 0x36a   :  { %v1783_v52 = vadd.f32 %v1381_v51, %v1059_v49  ;;  %v1383_v53 = vpop.f32.mrb[9].mxu1 }
 0x36b   :  { %v1784_v54 = vadd.f32 %v1383_v53, %v1063_v50  ;;  %v1385_v55 = vpop.f32.mrb[10].mxu1 }
 0x36c   :  { %v1388_v56 = vmax.f32 %v1783_v52, 0.0  ;;  %v1386_v57 = vpop.f32.mrb[11].mxu1 }
 0x36d   :  { %v1389_v58 = vmax.f32 %v1784_v54, 0.0 }
 0x36e   :  { %v1390_v60 = vpack.c.bf16 %v1388_v56, %v1388_v56 }
 0x36f   :  { %v1391_v59 = vpack.c.bf16 %v1389_v58, %v1389_v58 }
 0x371   :  { %1526 = vmatprep.mubr.bf16.mxu0 %v1391_v59 }
 0x372   :  { %1527 = vmatmul.mubr.bf16.vlgmr.msra.gmra.mrb[12].mxu0 %v1390_v60 }
 0x445   :  { %v1747_v61 = vpop.f32.mrb[12].mxu0 }
 0x446   :  { %v1748_v62 = vpop.f32.mrb[13].mxu0 }
 0x447   :  { %v1749_v1 = vadd.f32 %v1748_v62, %v1747_v61  ;;  %v1750_v32 = vpop.f32.mrb[14].mxu0 }
 0x448   :  { %v1751_v2 = vpop.f32.mrb[15].mxu0 }
 0x449   :  { %v1529_v3 = vadd.f32 %v1749_v1, %v1680_v41 }
 0x44b   :  { %1534 = vmax.xlane.f32.xlu0 %v1529_v3 }
 0x4d8   :  { %v1535_v4 = vpop.xlane.xlu0 %1534 }
 0x4d9   :  { %v1536_v5 = vsub.f32 %v1529_v3, %v1535_v4 }
 0x4db   :  { %v1537_v6 = vmul.f32 1.442695, %v1536_v5 }
 0x4dd   :  { %2002 = vpow2.f32 %v1537_v6 }
 0x4e7   :  { %v2003_v7 = vpop.eup %2002 }
 0x4e8   :  { %1539 = vadd.xlane.f32.xlu0 %v2003_v7 }
 0x575   :  { %v1540_v8 = vpop.xlane.xlu0 %1539 }
 0x576   :  { %2004 = vrcp.f32 %v1540_v8 }
 0x580   :  { %v2005_v9 = vpop.eup %2004 }
 0x581   :  { %v1542_v10 = vmul.f32 %v2005_v9, %v2003_v7 }
 0x583   :  { %1543 = vst [vmem:[%s2377_s11] sm:$0xff] %v1542_v10 }
 0x584   :  { %1548 = vsyncpa [#allocation3], 1 }
 0x585   :  { %1549 = vsyncpa [#allocation5], 1 }
 0x586   :  { %1550 = vsyncpa [#allocation8], 1 }
 0x587   :  { %1551 = vsyncpa [#allocation11], 1 }

</bundles_post_ra>
